<compile_context>
chip_gen: v7x
topology: tpu7x:2x2x1
jax: 0.10.0
libtpu: 0.0.40
codegen_flags: <defaults>
</compile_context>

<pallas_src>
import jax
import jax.numpy as jnp
import numpy as np
from jax.experimental import pallas as pl
from jax.experimental.pallas import tpu as pltpu


# ------------------------------ Pallas kernel -------------------------------

def _conv3x3_bn_relu(pad_ref, w_ref, bias, h2, w2):
    """3x3 conv (padding already in pad_ref) + folded-BN bias + ReLU.

    pad_ref: VMEM (H2+2, W2+2, Cin)   zero-padded input
    w_ref  : (9, Cin, Cout)           taps (kh*3+kw), BN scale pre-folded
    bias   : (1, Cout)                folded conv-bias + BN shift
    returns: (H2*W2, Cout) f32
    """
    m = h2 * w2
    cin = pad_ref.shape[-1]
    w_taps = w_ref[...]                                    # (9, Cin, Cout), loaded once
    acc = None
    for dy in range(3):
        for dx in range(3):
            # (H2, W2, Cin) tap window -> (H2*W2, Cin); sublane-aligned reshape (W2 % 8 == 0).
            patch = pad_ref[pl.ds(dy, h2), pl.ds(dx, w2), :].reshape(m, cin)
            part = jnp.dot(patch, w_taps[dy * 3 + dx],
                           preferred_element_type=jnp.float32)
            acc = part if acc is None else acc + part
    return jnp.maximum(acc + bias, 0.0)


def _down_fused_kernel(x_ref, w1_ref, b1_ref, w2_ref, b2_ref, o_ref,
                       pad1_ref, pad2_ref):
    # x_ref : (1, H, W2, 2*Cin)  -- NHWC with the two W-neighbours of each pool window packed
    #                               into the lane dim (wrapper-side free reshape).
    # o_ref : (1, H2*W2, Cout)
    h2 = pad1_ref.shape[0] - 2
    w2 = pad1_ref.shape[1] - 2
    cin = pad1_ref.shape[2]
    cmid = pad2_ref.shape[2]

    # ---------------- MaxPool2d(2) on the VPU ----------------
    x = x_ref[0]                                           # (H, W2, 2*Cin)
    xw = jnp.maximum(x[..., :cin], x[..., cin:])           # pool over W -> (H, W2, Cin)
    xr = xw.reshape(h2, 2, w2, cin)                        # leading-dim split only (no relayout)
    pooled = jnp.maximum(xr[:, 0], xr[:, 1])               # pool over H -> (H2, W2, Cin)

    # ---------------- conv1 3x3 (pad=1) + folded BN + ReLU ----------------
    pad1_ref[...] = jnp.zeros_like(pad1_ref)
    pad1_ref[pl.ds(1, h2), pl.ds(1, w2), :] = pooled
    y1 = _conv3x3_bn_relu(pad1_ref, w1_ref, b1_ref[...], h2, w2)     # (H2*W2, Cmid)

    # ---------------- conv2 3x3 (pad=1) + folded BN + ReLU ----------------
    pad2_ref[...] = jnp.zeros_like(pad2_ref)
    pad2_ref[pl.ds(1, h2), pl.ds(1, w2), :] = y1.reshape(h2, w2, cmid)
    y2 = _conv3x3_bn_relu(pad2_ref, w2_ref, b2_ref[...], h2, w2)     # (H2*W2, Cout)

    # Single full-tile store (was 8 masked row stores per conv before).
    o_ref[0] = y2.astype(o_ref.dtype)


# ------------------------------ Wrapper / glue -------------------------------

def _fold_conv_bn(conv_w, conv_b, gamma, beta, mean, var, eps=1e-5):
    """Fold eval-mode BN into the conv: returns ((9, Cin, Cout) taps * scale, (1, Cout) bias)."""
    cout, cin = conv_w.shape[0], conv_w.shape[1]
    scale = gamma / jnp.sqrt(var + eps)                          # (Cout,)
    w_taps = jnp.transpose(conv_w, (2, 3, 1, 0)).reshape(9, cin, cout)   # tap = kh*3 + kw
    w_taps = w_taps * scale[None, None, :]
    bias = (conv_b - mean) * scale + beta
    return w_taps, bias.reshape(1, cout)


def down_forward(x_nchw, params):
    cw1, cb1, (g1, be1, m1, v1), cw2, cb2, (g2, be2, m2, v2) = params
    n, cin, h, w = x_nchw.shape
    cout = cw1.shape[0]
    h2, w2 = h // 2, w // 2

    # NCHW -> NHWC, then pack each 2-wide W pair's channels into the lane dim:
    # (N, H, W, C) -> (N, H, W/2, 2C). The reshape is free (contiguous trailing dims).
    x = jnp.transpose(x_nchw, (0, 2, 3, 1)).reshape(n, h, w2, 2 * cin)

    w1_taps, b1 = _fold_conv_bn(cw1, cb1, g1, be1, m1, v1)
    w2_taps, b2 = _fold_conv_bn(cw2, cb2, g2, be2, m2, v2)

    out = pl.pallas_call(
        _down_fused_kernel,
        out_shape=jax.ShapeDtypeStruct((n, h2 * w2, cout), jnp.float32),
        grid=(n,),                                   # one image per grid step (megacore-parallel)
        in_specs=[
            pl.BlockSpec((1, h, w2, 2 * cin), lambda i: (i, 0, 0, 0)),
            pl.BlockSpec((9, cin, cout), lambda i: (0, 0, 0)),
            pl.BlockSpec((1, cout), lambda i: (0, 0)),
            pl.BlockSpec((9, cout, cout), lambda i: (0, 0, 0)),
            pl.BlockSpec((1, cout), lambda i: (0, 0)),
        ],
        out_specs=pl.BlockSpec((1, h2 * w2, cout), lambda i: (i, 0, 0)),
        scratch_shapes=[
            pltpu.VMEM((h2 + 2, w2 + 2, cin), jnp.float32),   # padded pooled input (conv1)
            pltpu.VMEM((h2 + 2, w2 + 2, cout), jnp.float32),  # padded conv1 output (conv2)
        ],
        compiler_params=pltpu.CompilerParams(dimension_semantics=("parallel",)),
    )(x, w1_taps, b1, w2_taps, b2)

    # (N, H2*W2, Cout) -> NCHW
    return jnp.transpose(out.reshape(n, h2, w2, cout), (0, 3, 1, 2))


# ----------------------------- Parameters ------------------------------------

def init_down_params(key, cin, cout):
    ks = jax.random.split(key, 6)

    def conv_params(k, cin_, cout_):
        k1, k2 = jax.random.split(k)
        bound = 1.0 / np.sqrt(cin_ * 9)
        w = jax.random.uniform(k1, (cout_, cin_, 3, 3), jnp.float32, -bound, bound)
        b = jax.random.uniform(k2, (cout_,), jnp.float32, -bound, bound)
        return w, b

    def bn_params(k, c):
        kk = jax.random.split(k, 4)
        gamma = 1.0 + 0.1 * jax.random.normal(kk[0], (c,), jnp.float32)
        beta = 0.1 * jax.random.normal(kk[1], (c,), jnp.float32)
        mean = 0.1 * jax.random.normal(kk[2], (c,), jnp.float32)
        var = jnp.abs(jax.random.normal(kk[3], (c,), jnp.float32)) * 0.5 + 0.5
        return gamma, beta, mean, var

    cw1, cb1 = conv_params(ks[0], cin, cout)
    bn1 = bn_params(ks[1], cout)
    cw2, cb2 = conv_params(ks[2], cout, cout)
    bn2 = bn_params(ks[3], cout)
    return cw1, cb1, bn1, cw2, cb2, bn2


# ------------------------------ Pure-JAX reference ---------------------------

def reference_down(x_nchw, params):
    cw1, cb1, (g1, be1, m1, v1), cw2, cb2, (g2, be2, m2, v2) = params
    x = jnp.transpose(x_nchw, (0, 2, 3, 1))
    n, h, w, c = x.shape
    y = jnp.max(x.reshape(n, h // 2, 2, w // 2, 2, c), axis=(2, 4))

    def conv_bn_relu(y, cw, cb, g, be, m, v):
        out = jax.lax.conv_general_dilated(
            y, jnp.transpose(cw, (2, 3, 1, 0)), window_strides=(1, 1), padding="SAME",
            dimension_numbers=("NHWC", "HWIO", "NHWC"),
            precision=jax.lax.Precision.HIGHEST)
        scale = g / jnp.sqrt(v + 1e-5)
        bias = (cb - m) * scale + be
        return jnp.maximum(out * scale + bias, 0.0)

    y = conv_bn_relu(y, cw1, cb1, g1, be1, m1, v1)
    y = conv_bn_relu(y, cw2, cb2, g2, be2, m2, v2)
    return jnp.transpose(y, (0, 3, 1, 2))


# ----------------------------------- Main ------------------------------------

if __name__ == "__main__":
    key = jax.random.PRNGKey(0)
    kx, kp = jax.random.split(key)
    N, Cin, H, W = 2, 4, 16, 16
    Cout = 8

    x = jax.random.normal(kx, (N, Cin, H, W), jnp.float32)
    params = init_down_params(kp, Cin, Cout)

    out = jax.block_until_ready(down_forward(x, params))
    ref = jax.block_until_ready(reference_down(x, params))

    assert out.shape == (N, Cout, H // 2, W // 2), out.shape
    np.testing.assert_allclose(np.asarray(out), np.asarray(ref), rtol=1e-2, atol=1e-2)
    print("KERNEL_OK")
</pallas_src>

<mosaic_0001>
module attributes {stable_mosaic.version = 11 : i64} {
  func.func @_down_fused_kernel(%arg0: i32, %arg1: memref<1x16x8x8xf32, #tpu.memory_space<vmem>>, %arg2: memref<9x4x8xf32, #tpu.memory_space<vmem>>, %arg3: memref<1x8xf32, #tpu.memory_space<vmem>>, %arg4: memref<9x8x8xf32, #tpu.memory_space<vmem>>, %arg5: memref<1x8xf32, #tpu.memory_space<vmem>>, %arg6: memref<1x64x8xf32, #tpu.memory_space<vmem>>, %arg7: memref<10x10x4xf32, #tpu.memory_space<vmem>>, %arg8: memref<10x10x8xf32, #tpu.memory_space<vmem>>) attributes {dimension_semantics = [#tpu.dimension_semantics<parallel>], iteration_bounds = array<i64: 2>, scalar_prefetch = 0 : i64, scratch_operands = 2 : i64, tpu.core_type = #tpu.core_type<tc>, window_params = [{transform_indices = @transform_0, window_bounds = array<i64: 1, 16, 8, 8>}, {pipeline_mode = #tpu.pipeline_mode<synchronous>, transform_indices = @transform_1, window_bounds = array<i64: 9, 4, 8>}, {pipeline_mode = #tpu.pipeline_mode<synchronous>, transform_indices = @transform_2, window_bounds = array<i64: 1, 8>}, {pipeline_mode = #tpu.pipeline_mode<synchronous>, transform_indices = @transform_3, window_bounds = array<i64: 9, 8, 8>}, {pipeline_mode = #tpu.pipeline_mode<synchronous>, transform_indices = @transform_4, window_bounds = array<i64: 1, 8>}, {transform_indices = @transform_5, window_bounds = array<i64: 1, 64, 8>}]} {
    %c0 = arith.constant 0 : index
    %c0_0 = arith.constant 0 : index
    %c0_1 = arith.constant 0 : index
    %c0_2 = arith.constant 0 : index
    %0 = vector.load %arg1[%c0, %c0_0, %c0_1, %c0_2] : memref<1x16x8x8xf32, #tpu.memory_space<vmem>>, vector<1x16x8x8xf32>
    %1 = vector.shape_cast %0 : vector<1x16x8x8xf32> to vector<16x8x8xf32>
    %2 = vector.extract_strided_slice %1 {offsets = [0, 0, 0], sizes = [16, 8, 4], strides = [1, 1, 1]} : vector<16x8x8xf32> to vector<16x8x4xf32>
    %3 = vector.extract_strided_slice %1 {offsets = [0, 0, 4], sizes = [16, 8, 4], strides = [1, 1, 1]} : vector<16x8x8xf32> to vector<16x8x4xf32>
    %4 = arith.maximumf %2, %3 : vector<16x8x4xf32>
    %5 = vector.shape_cast %4 : vector<16x8x4xf32> to vector<8x2x8x4xf32>
    %6 = vector.extract_strided_slice %5 {offsets = [0, 0, 0, 0], sizes = [8, 1, 8, 4], strides = [1, 1, 1, 1]} : vector<8x2x8x4xf32> to vector<8x1x8x4xf32>
    %7 = vector.shape_cast %6 : vector<8x1x8x4xf32> to vector<8x8x4xf32>
    %8 = vector.extract_strided_slice %5 {offsets = [0, 1, 0, 0], sizes = [8, 1, 8, 4], strides = [1, 1, 1, 1]} : vector<8x2x8x4xf32> to vector<8x1x8x4xf32>
    %9 = vector.shape_cast %8 : vector<8x1x8x4xf32> to vector<8x8x4xf32>
    %10 = arith.maximumf %7, %9 : vector<8x8x4xf32>
    %cst = arith.constant 0.000000e+00 : f32
    %11 = vector.broadcast %cst : f32 to vector<10x10x4xf32>
    %c0_3 = arith.constant 0 : index
    %c0_4 = arith.constant 0 : index
    %c0_5 = arith.constant 0 : index
    %12 = vector.load %arg7[%c0_3, %c0_4, %c0_5] : memref<10x10x4xf32, #tpu.memory_space<vmem>>, vector<10x10x4xf32>
    tpu.vector_store %arg7[%c0_3, %c0_4, %c0_5], %11 {strides = array<i32>} : memref<10x10x4xf32, #tpu.memory_space<vmem>>, vector<10x10x4xf32>,
    %c1 = arith.constant 1 : index
    %c1_6 = arith.constant 1 : index
    %c0_7 = arith.constant 0 : index
    %13 = vector.load %arg7[%c1, %c1_6, %c0_7] : memref<10x10x4xf32, #tpu.memory_space<vmem>>, vector<8x8x4xf32>
    tpu.vector_store %arg7[%c1, %c1_6, %c0_7], %10 {strides = array<i32>} : memref<10x10x4xf32, #tpu.memory_space<vmem>>, vector<8x8x4xf32>,
    %c0_8 = arith.constant 0 : index
    %c0_9 = arith.constant 0 : index
    %14 = vector.load %arg3[%c0_8, %c0_9] : memref<1x8xf32, #tpu.memory_space<vmem>>, vector<1x8xf32>
    %c0_10 = arith.constant 0 : index
    %c0_11 = arith.constant 0 : index
    %c0_12 = arith.constant 0 : index
    %15 = vector.load %arg2[%c0_10, %c0_11, %c0_12] : memref<9x4x8xf32, #tpu.memory_space<vmem>>, vector<9x4x8xf32>
    %c0_13 = arith.constant 0 : index
    %c0_14 = arith.constant 0 : index
    %c0_15 = arith.constant 0 : index
    %16 = vector.load %arg7[%c0_13, %c0_14, %c0_15] : memref<10x10x4xf32, #tpu.memory_space<vmem>>, vector<8x8x4xf32>
    %17 = vector.shape_cast %16 : vector<8x8x4xf32> to vector<64x4xf32>
    %18 = vector.extract_strided_slice %15 {offsets = [0, 0, 0], sizes = [1, 4, 8], strides = [1, 1, 1]} : vector<9x4x8xf32> to vector<1x4x8xf32>
    %19 = vector.shape_cast %18 : vector<1x4x8xf32> to vector<4x8xf32>
    %cst_16 = arith.constant dense<0.000000e+00> : vector<64x8xf32>
    %20 = tpu.matmul %17, %19, %cst_16 {dimension_numbers = #tpu.dot_dimension_numbers<[1], [0], [0], [1], [0, 0, 1, 1], [], []>} : vector<64x4xf32>, vector<4x8xf32>, vector<64x8xf32> -> vector<64x8xf32>
    %c0_17 = arith.constant 0 : index
    %c1_18 = arith.constant 1 : index
    %c0_19 = arith.constant 0 : index
    %21 = vector.load %arg7[%c0_17, %c1_18, %c0_19] : memref<10x10x4xf32, #tpu.memory_space<vmem>>, vector<8x8x4xf32>
    %22 = vector.shape_cast %21 : vector<8x8x4xf32> to vector<64x4xf32>
    %23 = vector.extract_strided_slice %15 {offsets = [1, 0, 0], sizes = [1, 4, 8], strides = [1, 1, 1]} : vector<9x4x8xf32> to vector<1x4x8xf32>
    %24 = vector.shape_cast %23 : vector<1x4x8xf32> to vector<4x8xf32>
    %cst_20 = arith.constant dense<0.000000e+00> : vector<64x8xf32>
    %25 = tpu.matmul %22, %24, %cst_20 {dimension_numbers = #tpu.dot_dimension_numbers<[1], [0], [0], [1], [0, 0, 1, 1], [], []>} : vector<64x4xf32>, vector<4x8xf32>, vector<64x8xf32> -> vector<64x8xf32>
    %26 = arith.addf %20, %25 : vector<64x8xf32>
    %c0_21 = arith.constant 0 : index
    %c2 = arith.constant 2 : index
    %c0_22 = arith.constant 0 : index
    %27 = vector.load %arg7[%c0_21, %c2, %c0_22] : memref<10x10x4xf32, #tpu.memory_space<vmem>>, vector<8x8x4xf32>
    %28 = vector.shape_cast %27 : vector<8x8x4xf32> to vector<64x4xf32>
    %29 = vector.extract_strided_slice %15 {offsets = [2, 0, 0], sizes = [1, 4, 8], strides = [1, 1, 1]} : vector<9x4x8xf32> to vector<1x4x8xf32>
    %30 = vector.shape_cast %29 : vector<1x4x8xf32> to vector<4x8xf32>
    %cst_23 = arith.constant dense<0.000000e+00> : vector<64x8xf32>
    %31 = tpu.matmul %28, %30, %cst_23 {dimension_numbers = #tpu.dot_dimension_numbers<[1], [0], [0], [1], [0, 0, 1, 1], [], []>} : vector<64x4xf32>, vector<4x8xf32>, vector<64x8xf32> -> vector<64x8xf32>
    %32 = arith.addf %26, %31 : vector<64x8xf32>
    %c1_24 = arith.constant 1 : index
    %c0_25 = arith.constant 0 : index
    %c0_26 = arith.constant 0 : index
    %33 = vector.load %arg7[%c1_24, %c0_25, %c0_26] : memref<10x10x4xf32, #tpu.memory_space<vmem>>, vector<8x8x4xf32>
    %34 = vector.shape_cast %33 : vector<8x8x4xf32> to vector<64x4xf32>
    %35 = vector.extract_strided_slice %15 {offsets = [3, 0, 0], sizes = [1, 4, 8], strides = [1, 1, 1]} : vector<9x4x8xf32> to vector<1x4x8xf32>
    %36 = vector.shape_cast %35 : vector<1x4x8xf32> to vector<4x8xf32>
    %cst_27 = arith.constant dense<0.000000e+00> : vector<64x8xf32>
    %37 = tpu.matmul %34, %36, %cst_27 {dimension_numbers = #tpu.dot_dimension_numbers<[1], [0], [0], [1], [0, 0, 1, 1], [], []>} : vector<64x4xf32>, vector<4x8xf32>, vector<64x8xf32> -> vector<64x8xf32>
    %38 = arith.addf %32, %37 : vector<64x8xf32>
    %c1_28 = arith.constant 1 : index
    %c1_29 = arith.constant 1 : index
    %c0_30 = arith.constant 0 : index
    %39 = vector.load %arg7[%c1_28, %c1_29, %c0_30] : memref<10x10x4xf32, #tpu.memory_space<vmem>>, vector<8x8x4xf32>
    %40 = vector.shape_cast %39 : vector<8x8x4xf32> to vector<64x4xf32>
    %41 = vector.extract_strided_slice %15 {offsets = [4, 0, 0], sizes = [1, 4, 8], strides = [1, 1, 1]} : vector<9x4x8xf32> to vector<1x4x8xf32>
    %42 = vector.shape_cast %41 : vector<1x4x8xf32> to vector<4x8xf32>
    %cst_31 = arith.constant dense<0.000000e+00> : vector<64x8xf32>
    %43 = tpu.matmul %40, %42, %cst_31 {dimension_numbers = #tpu.dot_dimension_numbers<[1], [0], [0], [1], [0, 0, 1, 1], [], []>} : vector<64x4xf32>, vector<4x8xf32>, vector<64x8xf32> -> vector<64x8xf32>
    %44 = arith.addf %38, %43 : vector<64x8xf32>
    %c1_32 = arith.constant 1 : index
    %c2_33 = arith.constant 2 : index
    %c0_34 = arith.constant 0 : index
    %45 = vector.load %arg7[%c1_32, %c2_33, %c0_34] : memref<10x10x4xf32, #tpu.memory_space<vmem>>, vector<8x8x4xf32>
    %46 = vector.shape_cast %45 : vector<8x8x4xf32> to vector<64x4xf32>
    %47 = vector.extract_strided_slice %15 {offsets = [5, 0, 0], sizes = [1, 4, 8], strides = [1, 1, 1]} : vector<9x4x8xf32> to vector<1x4x8xf32>
    %48 = vector.shape_cast %47 : vector<1x4x8xf32> to vector<4x8xf32>
    %cst_35 = arith.constant dense<0.000000e+00> : vector<64x8xf32>
    %49 = tpu.matmul %46, %48, %cst_35 {dimension_numbers = #tpu.dot_dimension_numbers<[1], [0], [0], [1], [0, 0, 1, 1], [], []>} : vector<64x4xf32>, vector<4x8xf32>, vector<64x8xf32> -> vector<64x8xf32>
    %50 = arith.addf %44, %49 : vector<64x8xf32>
    %c2_36 = arith.constant 2 : index
    %c0_37 = arith.constant 0 : index
    %c0_38 = arith.constant 0 : index
    %51 = vector.load %arg7[%c2_36, %c0_37, %c0_38] : memref<10x10x4xf32, #tpu.memory_space<vmem>>, vector<8x8x4xf32>
    %52 = vector.shape_cast %51 : vector<8x8x4xf32> to vector<64x4xf32>
    %53 = vector.extract_strided_slice %15 {offsets = [6, 0, 0], sizes = [1, 4, 8], strides = [1, 1, 1]} : vector<9x4x8xf32> to vector<1x4x8xf32>
    %54 = vector.shape_cast %53 : vector<1x4x8xf32> to vector<4x8xf32>
    %cst_39 = arith.constant dense<0.000000e+00> : vector<64x8xf32>
    %55 = tpu.matmul %52, %54, %cst_39 {dimension_numbers = #tpu.dot_dimension_numbers<[1], [0], [0], [1], [0, 0, 1, 1], [], []>} : vector<64x4xf32>, vector<4x8xf32>, vector<64x8xf32> -> vector<64x8xf32>
    %56 = arith.addf %50, %55 : vector<64x8xf32>
    %c2_40 = arith.constant 2 : index
    %c1_41 = arith.constant 1 : index
    %c0_42 = arith.constant 0 : index
    %57 = vector.load %arg7[%c2_40, %c1_41, %c0_42] : memref<10x10x4xf32, #tpu.memory_space<vmem>>, vector<8x8x4xf32>
    %58 = vector.shape_cast %57 : vector<8x8x4xf32> to vector<64x4xf32>
    %59 = vector.extract_strided_slice %15 {offsets = [7, 0, 0], sizes = [1, 4, 8], strides = [1, 1, 1]} : vector<9x4x8xf32> to vector<1x4x8xf32>
    %60 = vector.shape_cast %59 : vector<1x4x8xf32> to vector<4x8xf32>
    %cst_43 = arith.constant dense<0.000000e+00> : vector<64x8xf32>
    %61 = tpu.matmul %58, %60, %cst_43 {dimension_numbers = #tpu.dot_dimension_numbers<[1], [0], [0], [1], [0, 0, 1, 1], [], []>} : vector<64x4xf32>, vector<4x8xf32>, vector<64x8xf32> -> vector<64x8xf32>
    %62 = arith.addf %56, %61 : vector<64x8xf32>
    %c2_44 = arith.constant 2 : index
    %c2_45 = arith.constant 2 : index
    %c0_46 = arith.constant 0 : index
    %63 = vector.load %arg7[%c2_44, %c2_45, %c0_46] : memref<10x10x4xf32, #tpu.memory_space<vmem>>, vector<8x8x4xf32>
    %64 = vector.shape_cast %63 : vector<8x8x4xf32> to vector<64x4xf32>
    %65 = vector.extract_strided_slice %15 {offsets = [8, 0, 0], sizes = [1, 4, 8], strides = [1, 1, 1]} : vector<9x4x8xf32> to vector<1x4x8xf32>
    %66 = vector.shape_cast %65 : vector<1x4x8xf32> to vector<4x8xf32>
    %cst_47 = arith.constant dense<0.000000e+00> : vector<64x8xf32>
    %67 = tpu.matmul %64, %66, %cst_47 {dimension_numbers = #tpu.dot_dimension_numbers<[1], [0], [0], [1], [0, 0, 1, 1], [], []>} : vector<64x4xf32>, vector<4x8xf32>, vector<64x8xf32> -> vector<64x8xf32>
    %68 = arith.addf %62, %67 : vector<64x8xf32>
    %69 = vector.broadcast %14 : vector<1x8xf32> to vector<64x8xf32>
    %70 = arith.addf %68, %69 : vector<64x8xf32>
    %cst_48 = arith.constant 0.000000e+00 : f32
    %71 = vector.broadcast %cst_48 : f32 to vector<64x8xf32>
    %72 = arith.maximumf %70, %71 : vector<64x8xf32>
    %cst_49 = arith.constant 0.000000e+00 : f32
    %73 = vector.broadcast %cst_49 : f32 to vector<10x10x8xf32>
    %c0_50 = arith.constant 0 : index
    %c0_51 = arith.constant 0 : index
    %c0_52 = arith.constant 0 : index
    %74 = vector.load %arg8[%c0_50, %c0_51, %c0_52] : memref<10x10x8xf32, #tpu.memory_space<vmem>>, vector<10x10x8xf32>
    tpu.vector_store %arg8[%c0_50, %c0_51, %c0_52], %73 {strides = array<i32>} : memref<10x10x8xf32, #tpu.memory_space<vmem>>, vector<10x10x8xf32>,
    %75 = vector.shape_cast %72 : vector<64x8xf32> to vector<8x8x8xf32>
    %c1_53 = arith.constant 1 : index
    %c1_54 = arith.constant 1 : index
    %c0_55 = arith.constant 0 : index
    %76 = vector.load %arg8[%c1_53, %c1_54, %c0_55] : memref<10x10x8xf32, #tpu.memory_space<vmem>>, vector<8x8x8xf32>
    tpu.vector_store %arg8[%c1_53, %c1_54, %c0_55], %75 {strides = array<i32>} : memref<10x10x8xf32, #tpu.memory_space<vmem>>, vector<8x8x8xf32>,
    %c0_56 = arith.constant 0 : index
    %c0_57 = arith.constant 0 : index
    %77 = vector.load %arg5[%c0_56, %c0_57] : memref<1x8xf32, #tpu.memory_space<vmem>>, vector<1x8xf32>
    %c0_58 = arith.constant 0 : index
    %c0_59 = arith.constant 0 : index
    %c0_60 = arith.constant 0 : index
    %78 = vector.load %arg4[%c0_58, %c0_59, %c0_60] : memref<9x8x8xf32, #tpu.memory_space<vmem>>, vector<9x8x8xf32>
    %c0_61 = arith.constant 0 : index
    %c0_62 = arith.constant 0 : index
    %c0_63 = arith.constant 0 : index
    %79 = vector.load %arg8[%c0_61, %c0_62, %c0_63] : memref<10x10x8xf32, #tpu.memory_space<vmem>>, vector<8x8x8xf32>
    %80 = vector.shape_cast %79 : vector<8x8x8xf32> to vector<64x8xf32>
    %81 = vector.extract_strided_slice %78 {offsets = [0, 0, 0], sizes = [1, 8, 8], strides = [1, 1, 1]} : vector<9x8x8xf32> to vector<1x8x8xf32>
    %82 = vector.shape_cast %81 : vector<1x8x8xf32> to vector<8x8xf32>
    %cst_64 = arith.constant dense<0.000000e+00> : vector<64x8xf32>
    %83 = tpu.matmul %80, %82, %cst_64 {dimension_numbers = #tpu.dot_dimension_numbers<[1], [0], [0], [1], [0, 0, 1, 1], [], []>} : vector<64x8xf32>, vector<8x8xf32>, vector<64x8xf32> -> vector<64x8xf32>
    %c0_65 = arith.constant 0 : index
    %c1_66 = arith.constant 1 : index
    %c0_67 = arith.constant 0 : index
    %84 = vector.load %arg8[%c0_65, %c1_66, %c0_67] : memref<10x10x8xf32, #tpu.memory_space<vmem>>, vector<8x8x8xf32>
    %85 = vector.shape_cast %84 : vector<8x8x8xf32> to vector<64x8xf32>
    %86 = vector.extract_strided_slice %78 {offsets = [1, 0, 0], sizes = [1, 8, 8], strides = [1, 1, 1]} : vector<9x8x8xf32> to vector<1x8x8xf32>
    %87 = vector.shape_cast %86 : vector<1x8x8xf32> to vector<8x8xf32>
    %cst_68 = arith.constant dense<0.000000e+00> : vector<64x8xf32>
    %88 = tpu.matmul %85, %87, %cst_68 {dimension_numbers = #tpu.dot_dimension_numbers<[1], [0], [0], [1], [0, 0, 1, 1], [], []>} : vector<64x8xf32>, vector<8x8xf32>, vector<64x8xf32> -> vector<64x8xf32>
    %89 = arith.addf %83, %88 : vector<64x8xf32>
    %c0_69 = arith.constant 0 : index
    %c2_70 = arith.constant 2 : index
    %c0_71 = arith.constant 0 : index
    %90 = vector.load %arg8[%c0_69, %c2_70, %c0_71] : memref<10x10x8xf32, #tpu.memory_space<vmem>>, vector<8x8x8xf32>
    %91 = vector.shape_cast %90 : vector<8x8x8xf32> to vector<64x8xf32>
    %92 = vector.extract_strided_slice %78 {offsets = [2, 0, 0], sizes = [1, 8, 8], strides = [1, 1, 1]} : vector<9x8x8xf32> to vector<1x8x8xf32>
    %93 = vector.shape_cast %92 : vector<1x8x8xf32> to vector<8x8xf32>
    %cst_72 = arith.constant dense<0.000000e+00> : vector<64x8xf32>
    %94 = tpu.matmul %91, %93, %cst_72 {dimension_numbers = #tpu.dot_dimension_numbers<[1], [0], [0], [1], [0, 0, 1, 1], [], []>} : vector<64x8xf32>, vector<8x8xf32>, vector<64x8xf32> -> vector<64x8xf32>
    %95 = arith.addf %89, %94 : vector<64x8xf32>
    %c1_73 = arith.constant 1 : index
    %c0_74 = arith.constant 0 : index
    %c0_75 = arith.constant 0 : index
    %96 = vector.load %arg8[%c1_73, %c0_74, %c0_75] : memref<10x10x8xf32, #tpu.memory_space<vmem>>, vector<8x8x8xf32>
    %97 = vector.shape_cast %96 : vector<8x8x8xf32> to vector<64x8xf32>
    %98 = vector.extract_strided_slice %78 {offsets = [3, 0, 0], sizes = [1, 8, 8], strides = [1, 1, 1]} : vector<9x8x8xf32> to vector<1x8x8xf32>
    %99 = vector.shape_cast %98 : vector<1x8x8xf32> to vector<8x8xf32>
    %cst_76 = arith.constant dense<0.000000e+00> : vector<64x8xf32>
    %100 = tpu.matmul %97, %99, %cst_76 {dimension_numbers = #tpu.dot_dimension_numbers<[1], [0], [0], [1], [0, 0, 1, 1], [], []>} : vector<64x8xf32>, vector<8x8xf32>, vector<64x8xf32> -> vector<64x8xf32>
    %101 = arith.addf %95, %100 : vector<64x8xf32>
    %c1_77 = arith.constant 1 : index
    %c1_78 = arith.constant 1 : index
    %c0_79 = arith.constant 0 : index
    %102 = vector.load %arg8[%c1_77, %c1_78, %c0_79] : memref<10x10x8xf32, #tpu.memory_space<vmem>>, vector<8x8x8xf32>
    %103 = vector.shape_cast %102 : vector<8x8x8xf32> to vector<64x8xf32>
    %104 = vector.extract_strided_slice %78 {offsets = [4, 0, 0], sizes = [1, 8, 8], strides = [1, 1, 1]} : vector<9x8x8xf32> to vector<1x8x8xf32>
    %105 = vector.shape_cast %104 : vector<1x8x8xf32> to vector<8x8xf32>
    %cst_80 = arith.constant dense<0.000000e+00> : vector<64x8xf32>
    %106 = tpu.matmul %103, %105, %cst_80 {dimension_numbers = #tpu.dot_dimension_numbers<[1], [0], [0], [1], [0, 0, 1, 1], [], []>} : vector<64x8xf32>, vector<8x8xf32>, vector<64x8xf32> -> vector<64x8xf32>
    %107 = arith.addf %101, %106 : vector<64x8xf32>
    %c1_81 = arith.constant 1 : index
    %c2_82 = arith.constant 2 : index
    %c0_83 = arith.constant 0 : index
    %108 = vector.load %arg8[%c1_81, %c2_82, %c0_83] : memref<10x10x8xf32, #tpu.memory_space<vmem>>, vector<8x8x8xf32>
    %109 = vector.shape_cast %108 : vector<8x8x8xf32> to vector<64x8xf32>
    %110 = vector.extract_strided_slice %78 {offsets = [5, 0, 0], sizes = [1, 8, 8], strides = [1, 1, 1]} : vector<9x8x8xf32> to vector<1x8x8xf32>
    %111 = vector.shape_cast %110 : vector<1x8x8xf32> to vector<8x8xf32>
    %cst_84 = arith.constant dense<0.000000e+00> : vector<64x8xf32>
    %112 = tpu.matmul %109, %111, %cst_84 {dimension_numbers = #tpu.dot_dimension_numbers<[1], [0], [0], [1], [0, 0, 1, 1], [], []>} : vector<64x8xf32>, vector<8x8xf32>, vector<64x8xf32> -> vector<64x8xf32>
    %113 = arith.addf %107, %112 : vector<64x8xf32>
    %c2_85 = arith.constant 2 : index
    %c0_86 = arith.constant 0 : index
    %c0_87 = arith.constant 0 : index
    %114 = vector.load %arg8[%c2_85, %c0_86, %c0_87] : memref<10x10x8xf32, #tpu.memory_space<vmem>>, vector<8x8x8xf32>
    %115 = vector.shape_cast %114 : vector<8x8x8xf32> to vector<64x8xf32>
    %116 = vector.extract_strided_slice %78 {offsets = [6, 0, 0], sizes = [1, 8, 8], strides = [1, 1, 1]} : vector<9x8x8xf32> to vector<1x8x8xf32>
    %117 = vector.shape_cast %116 : vector<1x8x8xf32> to vector<8x8xf32>
    %cst_88 = arith.constant dense<0.000000e+00> : vector<64x8xf32>
    %118 = tpu.matmul %115, %117, %cst_88 {dimension_numbers = #tpu.dot_dimension_numbers<[1], [0], [0], [1], [0, 0, 1, 1], [], []>} : vector<64x8xf32>, vector<8x8xf32>, vector<64x8xf32> -> vector<64x8xf32>
    %119 = arith.addf %113, %118 : vector<64x8xf32>
    %c2_89 = arith.constant 2 : index
    %c1_90 = arith.constant 1 : index
    %c0_91 = arith.constant 0 : index
    %120 = vector.load %arg8[%c2_89, %c1_90, %c0_91] : memref<10x10x8xf32, #tpu.memory_space<vmem>>, vector<8x8x8xf32>
    %121 = vector.shape_cast %120 : vector<8x8x8xf32> to vector<64x8xf32>
    %122 = vector.extract_strided_slice %78 {offsets = [7, 0, 0], sizes = [1, 8, 8], strides = [1, 1, 1]} : vector<9x8x8xf32> to vector<1x8x8xf32>
    %123 = vector.shape_cast %122 : vector<1x8x8xf32> to vector<8x8xf32>
    %cst_92 = arith.constant dense<0.000000e+00> : vector<64x8xf32>
    %124 = tpu.matmul %121, %123, %cst_92 {dimension_numbers = #tpu.dot_dimension_numbers<[1], [0], [0], [1], [0, 0, 1, 1], [], []>} : vector<64x8xf32>, vector<8x8xf32>, vector<64x8xf32> -> vector<64x8xf32>
    %125 = arith.addf %119, %124 : vector<64x8xf32>
    %c2_93 = arith.constant 2 : index
    %c2_94 = arith.constant 2 : index
    %c0_95 = arith.constant 0 : index
    %126 = vector.load %arg8[%c2_93, %c2_94, %c0_95] : memref<10x10x8xf32, #tpu.memory_space<vmem>>, vector<8x8x8xf32>
    %127 = vector.shape_cast %126 : vector<8x8x8xf32> to vector<64x8xf32>
    %128 = vector.extract_strided_slice %78 {offsets = [8, 0, 0], sizes = [1, 8, 8], strides = [1, 1, 1]} : vector<9x8x8xf32> to vector<1x8x8xf32>
    %129 = vector.shape_cast %128 : vector<1x8x8xf32> to vector<8x8xf32>
    %cst_96 = arith.constant dense<0.000000e+00> : vector<64x8xf32>
    %130 = tpu.matmul %127, %129, %cst_96 {dimension_numbers = #tpu.dot_dimension_numbers<[1], [0], [0], [1], [0, 0, 1, 1], [], []>} : vector<64x8xf32>, vector<8x8xf32>, vector<64x8xf32> -> vector<64x8xf32>
    %131 = arith.addf %125, %130 : vector<64x8xf32>
    %132 = vector.broadcast %77 : vector<1x8xf32> to vector<64x8xf32>
    %133 = arith.addf %131, %132 : vector<64x8xf32>
    %cst_97 = arith.constant 0.000000e+00 : f32
    %134 = vector.broadcast %cst_97 : f32 to vector<64x8xf32>
    %135 = arith.maximumf %133, %134 : vector<64x8xf32>
    %c0_98 = arith.constant 0 : index
    %c0_99 = arith.constant 0 : index
    %c0_100 = arith.constant 0 : index
    %136 = vector.load %arg6[%c0_98, %c0_99, %c0_100] : memref<1x64x8xf32, #tpu.memory_space<vmem>>, vector<1x64x8xf32>
    %137 = vector.shape_cast %136 : vector<1x64x8xf32> to vector<64x8xf32>
    %138 = vector.shape_cast %135 : vector<64x8xf32> to vector<1x64x8xf32>
    tpu.vector_store %arg6[%c0_98, %c0_99, %c0_100], %138 {strides = array<i32>} : memref<1x64x8xf32, #tpu.memory_space<vmem>>, vector<1x64x8xf32>,
    return
  }
  func.func @transform_0(%arg0: i32) -> (i32, i32, i32, i32) {
    %c0_i32 = arith.constant 0 : i32
    %c0_i32_0 = arith.constant 0 : i32
    %c0_i32_1 = arith.constant 0 : i32
    %c0_i32_2 = arith.constant 0 : i32
    return %arg0, %c0_i32, %c0_i32_0, %c0_i32_1 : i32, i32, i32, i32
  }
  func.func @transform_1(%arg0: i32) -> (i32, i32, i32) {
    %c0_i32 = arith.constant 0 : i32
    %c0_i32_0 = arith.constant 0 : i32
    %c0_i32_1 = arith.constant 0 : i32
    %c0_i32_2 = arith.constant 0 : i32
    return %c0_i32, %c0_i32_0, %c0_i32_1 : i32, i32, i32
  }
  func.func @transform_2(%arg0: i32) -> (i32, i32) {
    %c0_i32 = arith.constant 0 : i32
    %c0_i32_0 = arith.constant 0 : i32
    %c0_i32_1 = arith.constant 0 : i32
    return %c0_i32, %c0_i32_0 : i32, i32
  }
  func.func @transform_3(%arg0: i32) -> (i32, i32, i32) {
    %c0_i32 = arith.constant 0 : i32
    %c0_i32_0 = arith.constant 0 : i32
    %c0_i32_1 = arith.constant 0 : i32
    %c0_i32_2 = arith.constant 0 : i32
    return %c0_i32, %c0_i32_0, %c0_i32_1 : i32, i32, i32
  }
  func.func @transform_4(%arg0: i32) -> (i32, i32) {
    %c0_i32 = arith.constant 0 : i32
    %c0_i32_0 = arith.constant 0 : i32
    %c0_i32_1 = arith.constant 0 : i32
    return %c0_i32, %c0_i32_0 : i32, i32
  }
  func.func @transform_5(%arg0: i32) -> (i32, i32, i32) {
    %c0_i32 = arith.constant 0 : i32
    %c0_i32_0 = arith.constant 0 : i32
    %c0_i32_1 = arith.constant 0 : i32
    return %arg0, %c0_i32, %c0_i32_0 : i32, i32, i32
  }
}

</mosaic_0001>

<bundles_post_ra>
// kernel: tpu_custom_call.1
= control target key start
LH: loop header
LB: loop body
LE: loop exit
PB: predicated region body
PF: predicated region fallthrough
CT: control target
= control target key end

     0   :  { %s3886_s18 = smov 0   ;;  %s4469_s0 = inlined_call_operand.vmem [shape: f32[2,16,8,8], index: 0, kind: input, shape index: {}]   ;;  %s4470_s1 = inlined_call_operand.vmem [shape: f32[9,4,8], index: 1, kind: input, shape index: {}]   ;;  %s4471_s2 = inlined_call_operand.vmem [shape: f32[1,8], index: 2, kind: input, shape index: {}]   ;;  %s4472_s3 = inlined_call_operand.vmem [shape: f32[9,8,8], index: 3, kind: input, shape index: {}]   ;;  %s4473_s4 = inlined_call_operand.vmem [shape: f32[1,8], index: 4, kind: input, shape index: {}]   ;;  %s4474_s5 = inlined_call_operand.vmem [shape: f32[2,64,8], index: 5, kind: output, shape index: {}]  }
   0x1 LB: > { %s3126_s19 = sadd.s32 4294967295, %s3852_s18   ;;  %p3130_p0 = scmp.ge.s32.totalorder %s3852_s18, 1  ;;  %s3852_s18 = sphi %s3886_s18, %s15_s18  }
   0x2   : > { %p187_p1 = scmp.lt.s32.totalorder %s3852_s18, 3 }
   0x4   : > { %p188_p2 = pnand %p3130_p0, %p187_p1 }
   0x5   : > { %p3894_p3 = scmp.lt.s32.totalorder (!%p188_p2), %s3126_s19, 1  ;;  %vm329_vm0 = vcmask (!%p188_p2), 31744   ;;  %vm331_vm1 = vcmask (!%p188_p2), 25600   ;;  %v3854_v0 = vmov (!%p188_p2), 0.0   ;;  %s3855_s25 = smov (!%p188_p2), 124   ;;  %vm410_vm2 = vcmask (!%p188_p2), 1043456  }
   0x6   : > { %191 = sbr.rel (%p188_p2) target bundleno = 867 (0x363), region = 40  ;;  %335 = vst.msk [vmem:[#allocation2 + $0x20] sm:$0xff] (!%p188_p2), %vm329_vm0, %v3854_v0  ;;  %330 = vst.msk [vmem:[#allocation2] sm:$0xff] (!%p188_p2), %vm329_vm0, %v3854_v0  ;;  %v362_v8 = vld [vmem:[%s4470_s1 + $0x4] sm:$0xf] (!%p188_p2)  ;;  %vm1710_vm3 = vcmask (!%p188_p2), 64512  }
   0x7   : > { %336 = vst.msk [vmem:[#allocation2 + $0x28] sm:$0x3] (!%p188_p2), %vm331_vm1, %v3854_v0  ;;  %332 = vst.msk [vmem:[#allocation2 + $0x8] sm:$0x3] (!%p188_p2), %vm331_vm1, %v3854_v0  ;;  %3456 = vmatprep.subr.msk.mxu0 (!%p188_p2), %vm410_vm2, %v362_v8  ;;  %v361_v11 = vld [vmem:[%s4470_s1] sm:$0xf] (!%p188_p2) }
   0x8   : > { %333 = vst.msk [vmem:[#allocation2 + $0x10] sm:$0xff] (!%p188_p2), %vm329_vm0, %v3854_v0  ;;  %337 = vst.msk [vmem:[#allocation2 + $0x30] sm:$0xff] (!%p188_p2), %vm329_vm0, %v3854_v0  ;;  %3457 = vmatpush3.msk.msra.mxu0 (!%p188_p2), %vm410_vm2, %v362_v8  ;;  %v363_v44 = vld [vmem:[%s4470_s1 + $0x8] sm:$0xf] (!%p188_p2)  ;;  %vm1712_vm4 = vcmask (!%p188_p2), 58368  }
   0x9   : > { %334 = vst.msk [vmem:[#allocation2 + $0x18] sm:$0x3] (!%p188_p2), %vm331_vm1, %v3854_v0  ;;  %338 = vst.msk [vmem:[#allocation2 + $0x38] sm:$0x3] (!%p188_p2), %vm331_vm1, %v3854_v0  ;;  %3470 = vmatprep.subr.msk.mxu0 (!%p188_p2), %vm410_vm2, %v361_v11 }
   0xa   : > { %339 = vst.msk [vmem:[#allocation2 + $0x40] sm:$0xff] (!%p188_p2), %vm329_vm0, %v3854_v0  ;;  %341 = vst.msk [vmem:[#allocation2 + $0x50] sm:$0xff] (!%p188_p2), %vm329_vm0, %v3854_v0 }
   0xb   : > { %340 = vst.msk [vmem:[#allocation2 + $0x48] sm:$0x3] (!%p188_p2), %vm331_vm1, %v3854_v0  ;;  %342 = vst.msk [vmem:[#allocation2 + $0x58] sm:$0x3] (!%p188_p2), %vm331_vm1, %v3854_v0 }
   0xc   : > { %343 = vst.msk [vmem:[#allocation2 + $0x60] sm:$0xff] (!%p188_p2), %vm329_vm0, %v3854_v0  ;;  %345 = vst.msk [vmem:[#allocation2 + $0x70] sm:$0xff] (!%p188_p2), %vm329_vm0, %v3854_v0 }
   0xd   : > { %344 = vst.msk [vmem:[#allocation2 + $0x68] sm:$0x3] %vm331_vm1, %v3854_v0  ;;  %346 = vst.msk [vmem:[#allocation2 + $0x78] sm:$0x3] %vm331_vm1, %v3854_v0  ;;  %s4477_s19 = smov (!%p3894_p3, %s3126_s19), 1 }
   0xe   : > { %347 = vst.msk [vmem:[#allocation2 + $0x80] sm:$0xff] %vm329_vm0, %v3854_v0  ;;  %349 = vst.msk [vmem:[#allocation2 + $0x90] sm:$0xff] %vm329_vm0, %v3854_v0  ;;  %s3292_s21 = sshll.u32 %s4477_s19, 7  ;;  %v378_v5 = vld [vmem:[#allocation2 + $0x1] sm:$0xff]  ;;  %s3293_s20 = sshll.u32 %s4477_s19, 6 }
   0xf   : > { %348 = vst.msk [vmem:[#allocation2 + $0x88] sm:$0x3] %vm331_vm1, %v3854_v0  ;;  %350 = vst.msk [vmem:[#allocation2 + $0x98] sm:$0x3] %vm331_vm1, %v3854_v0  ;;  %s3946_s24 = scalar_lea.vmem %s4469_s0, %s3292_s21  ;;  %3458 = vmatprep.mubr.msk.f32.mxu0 %vm329_vm0, %v378_v5  ;;  %s224_s23 = scalar_lea.vmem %s4474_s5, %s3293_s20 }
  0x10   : > { %v227_v1 = vld [vmem:[%s3946_s24 + $0x10] sm:$0xff]  ;;  %v225_v2 = vld [vmem:[%s3946_s24] sm:$0xff]  ;;  %v228_v3 = vld [vmem:[%s3946_s24 + $0x18] sm:$0xff]  ;;  %1716 = vst.msk [vmem:[#allocation3 + $0x20] sm:$0xff] %vm1710_vm3, %v3854_v0 }
  0x11   : > { %261 = vrot.lane.b32.xlu1 %v227_v1, %s3855_s25  ;;  %257 = vrot.lane.b32.xlu0 %v225_v2, %s3855_s25  ;;  %v226_v4 = vld [vmem:[%s3946_s24 + $0x8] sm:$0xff]  ;;  %v229_v7 = vld [vmem:[%s3946_s24 + $0x20] sm:$0xff]  ;;  %1717 = vst.msk [vmem:[#allocation3 + $0x28] sm:$0x3] %vm1712_vm4, %v3854_v0  ;;  %1713 = vst.msk [vmem:[#allocation3 + $0x8] sm:$0x3] %vm1712_vm4, %v3854_v0 }
  0x12   : > { %v230_v6 = vld [vmem:[%s3946_s24 + $0x28] sm:$0xff]  ;;  %v232_v9 = vld [vmem:[%s3946_s24 + $0x38] sm:$0xff]  ;;  %v231_v10 = vld [vmem:[%s3946_s24 + $0x30] sm:$0xff]  ;;  %1711 = vst.msk [vmem:[#allocation3] sm:$0xff] %vm1710_vm3, %v3854_v0 }
  0x13   : > { %v234_v12 = vld [vmem:[%s3946_s24 + $0x48] sm:$0xff]  ;;  %v233_v13 = vld [vmem:[%s3946_s24 + $0x40] sm:$0xff]  ;;  %v236_v14 = vld [vmem:[%s3946_s24 + $0x58] sm:$0xff]  ;;  %1714 = vst.msk [vmem:[#allocation3 + $0x10] sm:$0xff] %vm1710_vm3, %v3854_v0 }
  0x14   : > { %v235_v15 = vld [vmem:[%s3946_s24 + $0x50] sm:$0xff]  ;;  %v238_v16 = vld [vmem:[%s3946_s24 + $0x68] sm:$0xff]  ;;  %v237_v17 = vld [vmem:[%s3946_s24 + $0x60] sm:$0xff]  ;;  %1715 = vst.msk [vmem:[#allocation3 + $0x18] sm:$0x3] %vm1712_vm4, %v3854_v0 }
  0x15   : > { %263 = vrot.lane.b32.xlu1 %v228_v3, %s3855_s25  ;;  %259 = vrot.lane.b32.xlu0 %v226_v4, %s3855_s25  ;;  %v3987_v18 = vld [vmem:[%s3946_s24 + $0x78] sm:$0xff]  ;;  %v3990_v19 = vld [vmem:[%s3946_s24 + $0x70] sm:$0xff]  ;;  %1718 = vst.msk [vmem:[#allocation3 + $0x30] sm:$0xff] %vm1710_vm3, %v3854_v0  ;;  %1720 = vst.msk [vmem:[#allocation3 + $0x40] sm:$0xff] %vm1710_vm3, %v3854_v0 }
  0x16   : > { %1719 = vst.msk [vmem:[#allocation3 + $0x38] sm:$0x3] %vm1712_vm4, %v3854_v0  ;;  %1721 = vst.msk [vmem:[#allocation3 + $0x48] sm:$0x3] %vm1712_vm4, %v3854_v0 }
  0x17   : > { %1722 = vst.msk [vmem:[#allocation3 + $0x50] sm:$0xff] %vm1710_vm3, %v3854_v0  ;;  %1724 = vst.msk [vmem:[#allocation3 + $0x60] sm:$0xff] %vm1710_vm3, %v3854_v0 }
  0x18   : > { %1723 = vst.msk [vmem:[#allocation3 + $0x58] sm:$0x3] %vm1712_vm4, %v3854_v0  ;;  %1725 = vst.msk [vmem:[#allocation3 + $0x68] sm:$0x3] %vm1712_vm4, %v3854_v0 }
  0x19   : > { %267 = vrot.lane.b32.xlu1 %v230_v6, %s3855_s25  ;;  %265 = vrot.lane.b32.xlu0 %v229_v7, %s3855_s25  ;;  %1726 = vst.msk [vmem:[#allocation3 + $0x70] sm:$0xff] %vm1710_vm3, %v3854_v0  ;;  %1728 = vst.msk [vmem:[#allocation3 + $0x80] sm:$0xff] %vm1710_vm3, %v3854_v0 }
  0x1a   : > { %1727 = vst.msk [vmem:[#allocation3 + $0x78] sm:$0x3] %vm1712_vm4, %v3854_v0  ;;  %1729 = vst.msk [vmem:[#allocation3 + $0x88] sm:$0x3] %vm1712_vm4, %v3854_v0 }
  0x1b   : > { %1730 = vst.msk [vmem:[#allocation3 + $0x90] sm:$0xff] %vm1710_vm3, %v3854_v0 }
  0x1c   : > { %1731 = vst.msk [vmem:[#allocation3 + $0x98] sm:$0x3] %vm1712_vm4, %v3854_v0 }
  0x1d   : > { %271 = vrot.lane.b32.xlu1 %v232_v9, %s3855_s25  ;;  %269 = vrot.lane.b32.xlu0 %v231_v10, %s3855_s25 }
  0x21   : > { %275 = vrot.lane.b32.xlu1 %v234_v12, %s3855_s25  ;;  %273 = vrot.lane.b32.xlu0 %v233_v13, %s3855_s25 }
  0x25   : > { %279 = vrot.lane.b32.xlu1 %v236_v14, %s3855_s25  ;;  %277 = vrot.lane.b32.xlu0 %v235_v15, %s3855_s25 }
  0x29   : > { %283 = vrot.lane.b32.xlu1 %v238_v16, %s3855_s25  ;;  %281 = vrot.lane.b32.xlu0 %v237_v17, %s3855_s25 }
  0x2d   : > { %287 = vrot.lane.b32.xlu1 %v3987_v18, %s3855_s25  ;;  %285 = vrot.lane.b32.xlu0 %v3990_v19, %s3855_s25 }
  0x83   : > { %v262_v20 = vpop.permute.xlu1 %261  ;;  %v258_v21 = vpop.permute.xlu0 %257 }
  0x84   : > { %v307_v24 = vmax.f32 %v227_v1, %v262_v20  ;;  %v305_v25 = vmax.f32 %v225_v2, %v258_v21 }
  0x87   : > { %v264_v22 = vpop.permute.xlu1 %263  ;;  %v260_v23 = vpop.permute.xlu0 %259 }
  0x88   : > { %v308_v26 = vmax.f32 %v228_v3, %v264_v22  ;;  %v306_v27 = vmax.f32 %v226_v4, %v260_v23  ;;  %v370_v4 = vld [vmem:[#allocation2] sm:$0xff]  ;;  %v366_v23 = vld [vmem:[%s4470_s1 + $0x14] sm:$0xf] }
  0x8a   : > { %v322_v28 = vmax.f32 %v307_v24, %v308_v26  ;;  %v321_v29 = vmax.f32 %v305_v25, %v306_v27  ;;  %v367_v25 = vld [vmem:[%s4470_s1 + $0x18] sm:$0xf]  ;;  %v368_v27 = vld [vmem:[%s4470_s1 + $0x1c] sm:$0xf] }
  0x8b   : > { %v268_v30 = vpop.permute.xlu1 %267  ;;  %v266_v31 = vpop.permute.xlu0 %265 }
  0x8c   : > { %353 = vst.msk [vmem:[#allocation2 + $0x21] sm:$0xff] %vm329_vm0, %v322_v28  ;;  %352 = vst.msk [vmem:[#allocation2 + $0x11] sm:$0xff] %vm329_vm0, %v321_v29  ;;  %v310_v32 = vmax.f32 %v230_v6, %v268_v30  ;;  %v309_v33 = vmax.f32 %v229_v7, %v266_v31  ;;  %v364_v7 = vld [vmem:[%s4470_s1 + $0xc] sm:$0xf]  ;;  %v369_v29 = vld [vmem:[%s4470_s1 + $0x20] sm:$0xf] }
  0x8d   : > { %v1251_v30 = vld [vmem:[#allocation2 + $0x90] sm:$0xff] }
  0x8e   : > { %v323_v34 = vmax.f32 %v309_v33, %v310_v32  ;;  %v1399_v31 = vld [vmem:[#allocation2 + $0x91] sm:$0xff]  ;;  %v1743_v33 = vld [vmem:[%s4472_s3 + $0x8] sm:$0xff] }
  0x8f   : > { %v272_v35 = vpop.permute.xlu1 %271  ;;  %v270_v36 = vpop.permute.xlu0 %269  ;;  %v1547_v32 = vld [vmem:[#allocation2 + $0x92] sm:$0xff]  ;;  %3582 = vmatprep.subr.mxu1 %v1743_v33 }
  0x90   : > { %354 = vst.msk [vmem:[#allocation2 + $0x31] sm:$0xff] %vm329_vm0, %v323_v34  ;;  %v312_v37 = vmax.f32 %v232_v9, %v272_v35  ;;  %v311_v38 = vmax.f32 %v231_v10, %v270_v36  ;;  %v1759_v34 = vld [vmem:[#allocation3 + $0x1] sm:$0xff]  ;;  %3583 = vmatpush3.msra.mxu1 %v1743_v33  ;;  %v3216_v36 = vld [vmem:[%s4471_s2] ss:$0 sm:$0xff] }
  0x91   : > { %3584 = vmatprep.mubr.msk.f32.mxu1 %vm1710_vm3, %v1759_v34  ;;  %v1742_v35 = vld [vmem:[%s4472_s3] sm:$0xff] }
  0x92   : > { %v324_v39 = vmax.f32 %v311_v38, %v312_v37  ;;  %3596 = vmatprep.subr.mxu1 %v1742_v35  ;;  %v3289_v33 = vld [vmem:[%s4473_s4] ss:$0 sm:$0xff] }
  0x93   : > { %v276_v40 = vpop.permute.xlu1 %275  ;;  %v274_v41 = vpop.permute.xlu0 %273  ;;  %v3999_v42 = vld [vmem:[#allocation2 + $0x11] sm:$0xff]  ;;  %v4001_v43 = vld [vmem:[#allocation2 + $0x21] sm:$0xff] }
  0x94   : > { %355 = vst.msk [vmem:[#allocation2 + $0x41] sm:$0xff] %vm329_vm0, %v324_v39  ;;  %v314_v45 = vmax.f32 %v234_v12, %v276_v40  ;;  %v313_v46 = vmax.f32 %v233_v13, %v274_v41  ;;  %3459 = vmatmul.mubr.msk.f32.vlgmr.msra.gmra.mrb[0].mxu0 %vm329_vm0, %v3999_v42  ;;  %v371_v6 = vld [vmem:[#allocation2 + $0x10] sm:$0xff]  ;;  %v4044_v8 = vld [vmem:[#allocation2 + $0x20] sm:$0xff] }
  0x95   : > { %3461 = vmatprep.mubr.msk.f32.mxu0 %vm329_vm0, %v4001_v43  ;;  %3471 = vmatpush3.msk.msra.mxu0 %vm410_vm2, %v361_v11  ;;  %v651_v13 = vld [vmem:[#allocation2 + $0x2] sm:$0xff] }
  0x96   : > { %v325_v47 = vmax.f32 %v313_v46, %v314_v45  ;;  %3484 = vmatprep.subr.msk.mxu0 %vm410_vm2, %v363_v44 }
  0x97   : > { %v280_v48 = vpop.permute.xlu1 %279  ;;  %v278_v49 = vpop.permute.xlu0 %277  ;;  %v4013_v50 = vld [vmem:[#allocation2 + $0x31] sm:$0xff] }
  0x98   : > { %356 = vst.msk [vmem:[#allocation2 + $0x51] sm:$0xff] %vm329_vm0, %v325_v47  ;;  %v316_v51 = vmax.f32 %v236_v14, %v280_v48  ;;  %v315_v52 = vmax.f32 %v235_v15, %v278_v49  ;;  %3462 = vmatmul.mubr.msk.f32.gmra.mrb[2].mxu0 %vm329_vm0, %v4013_v50  ;;  %v4050_v9 = vld [vmem:[#allocation2 + $0x30] sm:$0xff] }
  0x99   : > { %v652_v15 = vld [vmem:[#allocation2 + $0x12] sm:$0xff] }
  0x9a   : > { %v326_v53 = vmax.f32 %v315_v52, %v316_v51 }
  0x9b   : > { %v284_v54 = vpop.permute.xlu1 %283  ;;  %v282_v55 = vpop.permute.xlu0 %281  ;;  %v4018_v56 = vld [vmem:[#allocation2 + $0x41] sm:$0xff] }
  0x9c   : > { %357 = vst.msk [vmem:[#allocation2 + $0x61] sm:$0xff] %vm329_vm0, %v326_v53  ;;  %v318_v57 = vmax.f32 %v238_v16, %v284_v54  ;;  %v317_v58 = vmax.f32 %v237_v17, %v282_v55  ;;  %3464 = vmatprep.mubr.msk.f32.mxu0 %vm329_vm0, %v4018_v56  ;;  %v4054_v10 = vld [vmem:[#allocation2 + $0x40] sm:$0xff]  ;;  %v365_v16 = vld [vmem:[%s4470_s1 + $0x10] sm:$0xf] }
  0x9d   : > { %v4075_v17 = vld [vmem:[#allocation2 + $0x22] sm:$0xff] }
  0x9e   : > { %v327_v59 = vmax.f32 %v317_v58, %v318_v57  ;;  %v1744_v58 = vld [vmem:[%s4472_s3 + $0x10] sm:$0xff] }
  0x9f   : > { %v4023_v60 = vld [vmem:[#allocation2 + $0x51] sm:$0xff]  ;;  %v288_v61 = vpop.permute.xlu1 %287  ;;  %v286_v62 = vpop.permute.xlu0 %285 }
  0xa0   : > { %358 = vst.msk [vmem:[#allocation2 + $0x71] sm:$0xff] %vm329_vm0, %v327_v59  ;;  %3465 = vmatmul.mubr.msk.f32.gmra.mrb[4].mxu0 %vm329_vm0, %v4023_v60  ;;  %v320_v63 = vmax.f32 %v3987_v18, %v288_v61  ;;  %v319_v1 = vmax.f32 %v3990_v19, %v286_v62  ;;  %v4058_v11 = vld [vmem:[#allocation2 + $0x50] sm:$0xff]  ;;  %v4085_v19 = vld [vmem:[#allocation2 + $0x42] sm:$0xff] }
  0xa1   : > { %v4081_v18 = vld [vmem:[#allocation2 + $0x32] sm:$0xff] }
  0xa2   : > { %v328_v2 = vmax.f32 %v319_v1, %v320_v63  ;;  %v4089_v20 = vld [vmem:[#allocation2 + $0x52] sm:$0xff] }
  0xa3   : > { %v4030_v3 = vld [vmem:[#allocation2 + $0x61] sm:$0xff] }
  0xa4   : > { %3467 = vmatprep.mubr.msk.f32.mxu0 %vm329_vm0, %v4030_v3  ;;  %359 = vst.msk [vmem:[#allocation2 + $0x81] sm:$0xff] %vm329_vm0, %v328_v2  ;;  %v4062_v12 = vld [vmem:[#allocation2 + $0x60] sm:$0xff] }
  0xa5   : > { %v4093_v21 = vld [vmem:[#allocation2 + $0x62] sm:$0xff] }
  0xa7   : > { %v4035_v5 = vld [vmem:[#allocation2 + $0x71] sm:$0xff] }
  0xa8   : > { %3468 = vmatmul.mubr.msk.f32.gmra.mrb[6].mxu0 %vm329_vm0, %v4035_v5  ;;  %v4066_v14 = vld [vmem:[#allocation2 + $0x70] sm:$0xff] }
  0xa9   : > { %3472 = vmatprep.mubr.msk.f32.mxu0 %vm329_vm0, %v370_v4  ;;  %v4097_v22 = vld [vmem:[#allocation2 + $0x72] sm:$0xff]  ;;  %v1751_v4 = vld [vmem:[#allocation3] sm:$0xff] }
  0xab   : > { %v806_v24 = vld [vmem:[#allocation2 + $0x80] sm:$0xff] }
  0xac   : > { %3473 = vmatmul.mubr.msk.f32.vlgmr.msra.gmra.mrb[0].mxu0 %vm329_vm0, %v371_v6  ;;  %v954_v26 = vld [vmem:[#allocation2 + $0x81] sm:$0xff] }
  0xad   : > { %3485 = vmatpush3.msk.msra.mxu0 %vm410_vm2, %v363_v44  ;;  %3475 = vmatprep.mubr.msk.f32.mxu0 %vm329_vm0, %v4044_v8  ;;  %v1102_v28 = vld [vmem:[#allocation2 + $0x82] sm:$0xff] }
  0xae   : > { %3498 = vmatprep.subr.msk.mxu0 %vm410_vm2, %v364_v7 }
  0xb0   : > { %3476 = vmatmul.mubr.msk.f32.gmra.mrb[2].mxu0 %vm329_vm0, %v4050_v9 }
  0xb1   : > { %3478 = vmatprep.mubr.msk.f32.mxu0 %vm329_vm0, %v4054_v10 }
  0xb4   : > { %3479 = vmatmul.mubr.msk.f32.gmra.mrb[4].mxu0 %vm329_vm0, %v4058_v11 }
  0xb5   : > { %3481 = vmatprep.mubr.msk.f32.mxu0 %vm329_vm0, %v4062_v12 }
  0xb8   : > { %3482 = vmatmul.mubr.msk.f32.gmra.mrb[6].mxu0 %vm329_vm0, %v4066_v14 }
  0xb9   : > { %3486 = vmatprep.mubr.msk.f32.mxu0 %vm329_vm0, %v651_v13  ;;  %v2025_v13 = vld [vmem:[#allocation3 + $0x2] sm:$0xff] }
  0xbc   : > { %3487 = vmatmul.mubr.msk.f32.vlgmr.msra.gmra.mrb[0].mxu0 %vm329_vm0, %v652_v15 }
  0xbd   : > { %3499 = vmatpush3.msk.msra.mxu0 %vm410_vm2, %v364_v7  ;;  %3489 = vmatprep.mubr.msk.f32.mxu0 %vm329_vm0, %v4075_v17  ;;  %v1745_v7 = vld [vmem:[%s4472_s3 + $0x18] sm:$0xff] }
  0xbe   : > { %3512 = vmatprep.subr.msk.mxu0 %vm410_vm2, %v365_v16 }
  0xc0   : > { %3490 = vmatmul.mubr.msk.f32.gmra.mrb[2].mxu0 %vm329_vm0, %v4081_v18 }
  0xc1   : > { %3492 = vmatprep.mubr.msk.f32.mxu0 %vm329_vm0, %v4085_v19 }
  0xc4   : > { %3493 = vmatmul.mubr.msk.f32.gmra.mrb[4].mxu0 %vm329_vm0, %v4089_v20 }
  0xc5   : > { %3495 = vmatprep.mubr.msk.f32.mxu0 %vm329_vm0, %v4093_v21 }
  0xc8   : > { %3496 = vmatmul.mubr.msk.f32.gmra.mrb[6].mxu0 %vm329_vm0, %v4097_v22 }
  0xc9   : > { %3500 = vmatprep.mubr.msk.f32.mxu0 %vm329_vm0, %v371_v6 }
  0xcc   : > { %3501 = vmatmul.mubr.msk.f32.vlgmr.msra.gmra.mrb[0].mxu0 %vm329_vm0, %v4044_v8 }
  0xcd   : > { %3513 = vmatpush3.msk.msra.mxu0 %vm410_vm2, %v365_v16  ;;  %3503 = vmatprep.mubr.msk.f32.mxu0 %vm329_vm0, %v4050_v9  ;;  %v1746_v16 = vld [vmem:[%s4472_s3 + $0x20] sm:$0xff] }
  0xce   : > { %3526 = vmatprep.subr.msk.mxu0 %vm410_vm2, %v366_v23 }
  0xd0   : > { %3504 = vmatmul.mubr.msk.f32.gmra.mrb[2].mxu0 %vm329_vm0, %v4054_v10 }
  0xd1   : > { %3506 = vmatprep.mubr.msk.f32.mxu0 %vm329_vm0, %v4058_v11 }
  0xd4   : > { %3507 = vmatmul.mubr.msk.f32.gmra.mrb[4].mxu0 %vm329_vm0, %v4062_v12 }
  0xd5   : > { %3509 = vmatprep.mubr.msk.f32.mxu0 %vm329_vm0, %v4066_v14 }
  0xd8   : > { %3510 = vmatmul.mubr.msk.f32.gmra.mrb[6].mxu0 %vm329_vm0, %v806_v24 }
  0xd9   : > { %3514 = vmatprep.mubr.msk.f32.mxu0 %vm329_vm0, %v3999_v42 }
  0xdc   : > { %3515 = vmatmul.mubr.msk.f32.vlgmr.msra.gmra.mrb[0].mxu0 %vm329_vm0, %v4001_v43 }
  0xdd   : > { %3527 = vmatpush3.msk.msra.mxu0 %vm410_vm2, %v366_v23  ;;  %3517 = vmatprep.mubr.msk.f32.mxu0 %vm329_vm0, %v4013_v50  ;;  %v1747_v23 = vld [vmem:[%s4472_s3 + $0x28] sm:$0xff] }
  0xde   : > { %3540 = vmatprep.subr.msk.mxu0 %vm410_vm2, %v367_v25 }
  0xe0   : > { %3518 = vmatmul.mubr.msk.f32.gmra.mrb[2].mxu0 %vm329_vm0, %v4018_v56 }
  0xe1   : > { %3520 = vmatprep.mubr.msk.f32.mxu0 %vm329_vm0, %v4023_v60 }
  0xe4   : > { %3521 = vmatmul.mubr.msk.f32.gmra.mrb[4].mxu0 %vm329_vm0, %v4030_v3 }
  0xe5   : > { %3523 = vmatprep.mubr.msk.f32.mxu0 %vm329_vm0, %v4035_v5 }
  0xe8   : > { %3524 = vmatmul.mubr.msk.f32.gmra.mrb[6].mxu0 %vm329_vm0, %v954_v26 }
  0xe9   : > { %3528 = vmatprep.mubr.msk.f32.mxu0 %vm329_vm0, %v652_v15 }
  0xec   : > { %3529 = vmatmul.mubr.msk.f32.vlgmr.msra.gmra.mrb[0].mxu0 %vm329_vm0, %v4075_v17 }
  0xed   : > { %3541 = vmatpush3.msk.msra.mxu0 %vm410_vm2, %v367_v25  ;;  %3531 = vmatprep.mubr.msk.f32.mxu0 %vm329_vm0, %v4081_v18  ;;  %v1748_v25 = vld [vmem:[%s4472_s3 + $0x30] sm:$0xff] }
  0xee   : > { %3554 = vmatprep.subr.msk.mxu0 %vm410_vm2, %v368_v27 }
  0xf0   : > { %3532 = vmatmul.mubr.msk.f32.gmra.mrb[2].mxu0 %vm329_vm0, %v4085_v19 }
  0xf1   : > { %3534 = vmatprep.mubr.msk.f32.mxu0 %vm329_vm0, %v4089_v20 }
  0xf4   : > { %3535 = vmatmul.mubr.msk.f32.gmra.mrb[4].mxu0 %vm329_vm0, %v4093_v21 }
  0xf5   : > { %3537 = vmatprep.mubr.msk.f32.mxu0 %vm329_vm0, %v4097_v22 }
  0xf8   : > { %3538 = vmatmul.mubr.msk.f32.gmra.mrb[6].mxu0 %vm329_vm0, %v1102_v28 }
  0xf9   : > { %3542 = vmatprep.mubr.msk.f32.mxu0 %vm329_vm0, %v4044_v8 }
  0xfc   : > { %3543 = vmatmul.mubr.msk.f32.vlgmr.msra.gmra.mrb[0].mxu0 %vm329_vm0, %v4050_v9 }
  0xfd   : > { %3555 = vmatpush3.msk.msra.mxu0 %vm410_vm2, %v368_v27  ;;  %3545 = vmatprep.mubr.msk.f32.mxu0 %vm329_vm0, %v4054_v10  ;;  %v1749_v27 = vld [vmem:[%s4472_s3 + $0x38] sm:$0xff] }
  0xfe   : > { %3568 = vmatprep.subr.msk.mxu0 %vm410_vm2, %v369_v29 }
 0x100   : > { %3546 = vmatmul.mubr.msk.f32.gmra.mrb[2].mxu0 %vm329_vm0, %v4058_v11 }
 0x101   : > { %3548 = vmatprep.mubr.msk.f32.mxu0 %vm329_vm0, %v4062_v12 }
 0x104   : > { %3549 = vmatmul.mubr.msk.f32.gmra.mrb[4].mxu0 %vm329_vm0, %v4066_v14 }
 0x105   : > { %3551 = vmatprep.mubr.msk.f32.mxu0 %vm329_vm0, %v806_v24 }
 0x108   : > { %3552 = vmatmul.mubr.msk.f32.gmra.mrb[6].mxu0 %vm329_vm0, %v1251_v30  ;;  %v2613_v30 = vld [vmem:[#allocation3 + $0x90] sm:$0xff] }
 0x109   : > { %3556 = vmatprep.mubr.msk.f32.mxu0 %vm329_vm0, %v4001_v43 }
 0x10c   : > { %3557 = vmatmul.mubr.msk.f32.vlgmr.msra.gmra.mrb[0].mxu0 %vm329_vm0, %v4013_v50 }
 0x10d   : > { %3569 = vmatpush3.msk.msra.mxu0 %vm410_vm2, %v369_v29  ;;  %3559 = vmatprep.mubr.msk.f32.mxu0 %vm329_vm0, %v4018_v56  ;;  %v1750_v29 = vld [vmem:[%s4472_s3 + $0x40] sm:$0xff] }
 0x110   : > { %3560 = vmatmul.mubr.msk.f32.gmra.mrb[2].mxu0 %vm329_vm0, %v4023_v60 }
 0x111   : > { %3562 = vmatprep.mubr.msk.f32.mxu0 %vm329_vm0, %v4030_v3 }
 0x114   : > { %3563 = vmatmul.mubr.msk.f32.gmra.mrb[4].mxu0 %vm329_vm0, %v4035_v5 }
 0x115   : > { %3565 = vmatprep.mubr.msk.f32.mxu0 %vm329_vm0, %v954_v26 }
 0x118   : > { %3566 = vmatmul.mubr.msk.f32.gmra.mrb[6].mxu0 %vm329_vm0, %v1399_v31  ;;  %v2758_v31 = vld [vmem:[#allocation3 + $0x91] sm:$0xff] }
 0x119   : > { %3570 = vmatprep.mubr.msk.f32.mxu0 %vm329_vm0, %v4075_v17 }
 0x11c   : > { %3571 = vmatmul.mubr.msk.f32.vlgmr.msra.gmra.mrb[0].mxu0 %vm329_vm0, %v4081_v18 }
 0x11d   : > { %3573 = vmatprep.mubr.msk.f32.mxu0 %vm329_vm0, %v4085_v19 }
 0x120   : > { %3574 = vmatmul.mubr.msk.f32.gmra.mrb[2].mxu0 %vm329_vm0, %v4089_v20 }
 0x121   : > { %3576 = vmatprep.mubr.msk.f32.mxu0 %vm329_vm0, %v4093_v21 }
 0x124   : > { %3577 = vmatmul.mubr.msk.f32.gmra.mrb[4].mxu0 %vm329_vm0, %v4097_v22 }
 0x125   : > { %3579 = vmatprep.mubr.msk.f32.mxu0 %vm329_vm0, %v1102_v28 }
 0x128   : > { %3580 = vmatmul.mubr.msk.f32.gmra.mrb[6].mxu0 %vm329_vm0, %v1547_v32  ;;  %v2903_v32 = vld [vmem:[#allocation3 + $0x92] sm:$0xff] }
 0x1ef   : > { %v3572_v37 = vpop.f32.mrb[0].mxu0 }
 0x1f0   : > { %v1695_v0 = vadd.f32 %v3572_v37, %v3216_v36  ;;  %v1641_v38 = vpop.f32.mrb[1].mxu0 }
 0x1f1   : > { %v1694_v39 = vadd.f32 %v3216_v36, %v1641_v38 }
 0x1f2   : > { %v1703_v40 = vmax.f32 %v1695_v0, 0.0 }
 0x1f3   : > { %v1702_v41 = vmax.f32 %v1694_v39, 0.0  ;;  %v3575_v42 = vpop.f32.mrb[2].mxu0 }
 0x1f4   : > { %1734 = vst.msk [vmem:[#allocation3 + $0x21] sm:$0xff] %vm1710_vm3, %v1703_v40  ;;  %v1697_v43 = vadd.f32 %v3575_v42, %v3216_v36  ;;  %v1651_v44 = vpop.f32.mrb[3].mxu0 }
 0x1f5   : > { %1733 = vst.msk [vmem:[#allocation3 + $0x11] sm:$0xff] %vm1710_vm3, %v1702_v41  ;;  %v1696_v45 = vadd.f32 %v3216_v36, %v1651_v44 }
 0x1f6   : > { %v1705_v46 = vmax.f32 %v1697_v43, 0.0 }
 0x1f7   : > { %v1704_v47 = vmax.f32 %v1696_v45, 0.0  ;;  %v3578_v48 = vpop.f32.mrb[4].mxu0 }
 0x1f8   : > { %1736 = vst.msk [vmem:[#allocation3 + $0x41] sm:$0xff] %vm1710_vm3, %v1705_v46  ;;  %v1699_v49 = vadd.f32 %v3578_v48, %v3216_v36  ;;  %v1661_v50 = vpop.f32.mrb[5].mxu0 }
 0x1f9   : > { %1735 = vst.msk [vmem:[#allocation3 + $0x31] sm:$0xff] %vm1710_vm3, %v1704_v47  ;;  %v1698_v51 = vadd.f32 %v3216_v36, %v1661_v50 }
 0x1fa   : > { %v1707_v52 = vmax.f32 %v1699_v49, 0.0 }
 0x1fb   : > { %v1706_v53 = vmax.f32 %v1698_v51, 0.0  ;;  %v3581_v54 = vpop.f32.mrb[6].mxu0  ;;  %v4270_v60 = vld [vmem:[#allocation3 + $0x21] sm:$0xff] }
 0x1fc   : > { %1738 = vst.msk [vmem:[#allocation3 + $0x61] sm:$0xff] %vm1710_vm3, %v1707_v52  ;;  %v1701_v55 = vadd.f32 %v3581_v54, %v3216_v36  ;;  %v1671_v56 = vpop.f32.mrb[7].mxu0  ;;  %v4262_v57 = vld [vmem:[#allocation3 + $0x11] sm:$0xff]  ;;  %v4301_v8 = vld [vmem:[#allocation3 + $0x20] sm:$0xff] }
 0x1fd   : > { %1737 = vst.msk [vmem:[#allocation3 + $0x51] sm:$0xff] %vm1710_vm3, %v1706_v53  ;;  %v1700_v59 = vadd.f32 %v3216_v36, %v1671_v56  ;;  %3585 = vmatmul.mubr.msk.f32.vlgmr.msra.gmra.mrb[0].mxu1 %vm1710_vm3, %v4262_v57  ;;  %v1752_v6 = vld [vmem:[#allocation3 + $0x10] sm:$0xff]  ;;  %v4330_v17 = vld [vmem:[#allocation3 + $0x22] sm:$0xff] }
 0x1fe   : > { %v1709_v61 = vmax.f32 %v1701_v55, 0.0  ;;  %3597 = vmatpush3.msra.mxu1 %v1742_v35  ;;  %3587 = vmatprep.mubr.msk.f32.mxu1 %vm1710_vm3, %v4270_v60  ;;  %v2026_v15 = vld [vmem:[#allocation3 + $0x12] sm:$0xff] }
 0x1ff   : > { %v1708_v62 = vmax.f32 %v1700_v59, 0.0  ;;  %3610 = vmatprep.subr.mxu1 %v1744_v58  ;;  %v4280_v1 = vld [vmem:[#allocation3 + $0x41] sm:$0xff] }
 0x200   : > { %1740 = vst.msk [vmem:[#allocation3 + $0x81] sm:$0xff] %vm1710_vm3, %v1709_v61  ;;  %v4275_v63 = vld [vmem:[#allocation3 + $0x31] sm:$0xff]  ;;  %v4309_v10 = vld [vmem:[#allocation3 + $0x40] sm:$0xff] }
 0x201   : > { %1739 = vst.msk [vmem:[#allocation3 + $0x71] sm:$0xff] %vm1710_vm3, %v1708_v62  ;;  %3588 = vmatmul.mubr.msk.f32.gmra.mrb[2].mxu1 %vm1710_vm3, %v4275_v63  ;;  %v4305_v9 = vld [vmem:[#allocation3 + $0x30] sm:$0xff]  ;;  %v4338_v19 = vld [vmem:[#allocation3 + $0x42] sm:$0xff] }
 0x202   : > { %3590 = vmatprep.mubr.msk.f32.mxu1 %vm1710_vm3, %v4280_v1  ;;  %v4334_v18 = vld [vmem:[#allocation3 + $0x32] sm:$0xff] }
 0x203   : > { %v4288_v3 = vld [vmem:[#allocation3 + $0x61] sm:$0xff] }
 0x204   : > { %v4284_v2 = vld [vmem:[#allocation3 + $0x51] sm:$0xff]  ;;  %v4317_v12 = vld [vmem:[#allocation3 + $0x60] sm:$0xff] }
 0x205   : > { %3591 = vmatmul.mubr.msk.f32.gmra.mrb[4].mxu1 %vm1710_vm3, %v4284_v2  ;;  %v4313_v11 = vld [vmem:[#allocation3 + $0x50] sm:$0xff]  ;;  %v4346_v21 = vld [vmem:[#allocation3 + $0x62] sm:$0xff] }
 0x206   : > { %3593 = vmatprep.mubr.msk.f32.mxu1 %vm1710_vm3, %v4288_v3  ;;  %v4342_v20 = vld [vmem:[#allocation3 + $0x52] sm:$0xff] }
 0x207   : > { %v2177_v24 = vld [vmem:[#allocation3 + $0x80] sm:$0xff] }
 0x208   : > { %v4292_v5 = vld [vmem:[#allocation3 + $0x71] sm:$0xff]  ;;  %v2322_v26 = vld [vmem:[#allocation3 + $0x81] sm:$0xff] }
 0x209   : > { %3594 = vmatmul.mubr.msk.f32.gmra.mrb[6].mxu1 %vm1710_vm3, %v4292_v5  ;;  %v4321_v14 = vld [vmem:[#allocation3 + $0x70] sm:$0xff]  ;;  %v2467_v28 = vld [vmem:[#allocation3 + $0x82] sm:$0xff] }
 0x20a   : > { %3598 = vmatprep.mubr.msk.f32.mxu1 %vm1710_vm3, %v1751_v4  ;;  %v4350_v22 = vld [vmem:[#allocation3 + $0x72] sm:$0xff] }
 0x20d   : > { %3599 = vmatmul.mubr.msk.f32.vlgmr.msra.gmra.mrb[0].mxu1 %vm1710_vm3, %v1752_v6 }
 0x20e   : > { %3611 = vmatpush3.msra.mxu1 %v1744_v58  ;;  %3601 = vmatprep.mubr.msk.f32.mxu1 %vm1710_vm3, %v4301_v8 }
 0x20f   : > { %3624 = vmatprep.subr.mxu1 %v1745_v7 }
 0x211   : > { %3602 = vmatmul.mubr.msk.f32.gmra.mrb[2].mxu1 %vm1710_vm3, %v4305_v9 }
 0x212   : > { %3604 = vmatprep.mubr.msk.f32.mxu1 %vm1710_vm3, %v4309_v10 }
 0x215   : > { %3605 = vmatmul.mubr.msk.f32.gmra.mrb[4].mxu1 %vm1710_vm3, %v4313_v11 }
 0x216   : > { %3607 = vmatprep.mubr.msk.f32.mxu1 %vm1710_vm3, %v4317_v12 }
 0x219   : > { %3608 = vmatmul.mubr.msk.f32.gmra.mrb[6].mxu1 %vm1710_vm3, %v4321_v14 }
 0x21a   : > { %3612 = vmatprep.mubr.msk.f32.mxu1 %vm1710_vm3, %v2025_v13 }
 0x21d   : > { %3613 = vmatmul.mubr.msk.f32.vlgmr.msra.gmra.mrb[0].mxu1 %vm1710_vm3, %v2026_v15 }
 0x21e   : > { %3625 = vmatpush3.msra.mxu1 %v1745_v7  ;;  %3615 = vmatprep.mubr.msk.f32.mxu1 %vm1710_vm3, %v4330_v17 }
 0x21f   : > { %3638 = vmatprep.subr.mxu1 %v1746_v16 }
 0x221   : > { %3616 = vmatmul.mubr.msk.f32.gmra.mrb[2].mxu1 %vm1710_vm3, %v4334_v18 }
 0x222   : > { %3618 = vmatprep.mubr.msk.f32.mxu1 %vm1710_vm3, %v4338_v19 }
 0x225   : > { %3619 = vmatmul.mubr.msk.f32.gmra.mrb[4].mxu1 %vm1710_vm3, %v4342_v20 }
 0x226   : > { %3621 = vmatprep.mubr.msk.f32.mxu1 %vm1710_vm3, %v4346_v21 }
 0x229   : > { %3622 = vmatmul.mubr.msk.f32.gmra.mrb[6].mxu1 %vm1710_vm3, %v4350_v22 }
 0x22a   : > { %3626 = vmatprep.mubr.msk.f32.mxu1 %vm1710_vm3, %v1752_v6 }
 0x22d   : > { %3627 = vmatmul.mubr.msk.f32.vlgmr.msra.gmra.mrb[0].mxu1 %vm1710_vm3, %v4301_v8 }
 0x22e   : > { %3639 = vmatpush3.msra.mxu1 %v1746_v16  ;;  %3629 = vmatprep.mubr.msk.f32.mxu1 %vm1710_vm3, %v4305_v9 }
 0x22f   : > { %3652 = vmatprep.subr.mxu1 %v1747_v23 }
 0x231   : > { %3630 = vmatmul.mubr.msk.f32.gmra.mrb[2].mxu1 %vm1710_vm3, %v4309_v10 }
 0x232   : > { %3632 = vmatprep.mubr.msk.f32.mxu1 %vm1710_vm3, %v4313_v11 }
 0x235   : > { %3633 = vmatmul.mubr.msk.f32.gmra.mrb[4].mxu1 %vm1710_vm3, %v4317_v12 }
 0x236   : > { %3635 = vmatprep.mubr.msk.f32.mxu1 %vm1710_vm3, %v4321_v14 }
 0x239   : > { %3636 = vmatmul.mubr.msk.f32.gmra.mrb[6].mxu1 %vm1710_vm3, %v2177_v24 }
 0x23a   : > { %3640 = vmatprep.mubr.msk.f32.mxu1 %vm1710_vm3, %v4262_v57 }
 0x23d   : > { %3641 = vmatmul.mubr.msk.f32.vlgmr.msra.gmra.mrb[0].mxu1 %vm1710_vm3, %v4270_v60 }
 0x23e   : > { %3653 = vmatpush3.msra.mxu1 %v1747_v23  ;;  %3643 = vmatprep.mubr.msk.f32.mxu1 %vm1710_vm3, %v4275_v63 }
 0x23f   : > { %3666 = vmatprep.subr.mxu1 %v1748_v25 }
 0x241   : > { %3644 = vmatmul.mubr.msk.f32.gmra.mrb[2].mxu1 %vm1710_vm3, %v4280_v1 }
 0x242   : > { %3646 = vmatprep.mubr.msk.f32.mxu1 %vm1710_vm3, %v4284_v2 }
 0x245   : > { %3647 = vmatmul.mubr.msk.f32.gmra.mrb[4].mxu1 %vm1710_vm3, %v4288_v3 }
 0x246   : > { %3649 = vmatprep.mubr.msk.f32.mxu1 %vm1710_vm3, %v4292_v5 }
 0x249   : > { %3650 = vmatmul.mubr.msk.f32.gmra.mrb[6].mxu1 %vm1710_vm3, %v2322_v26 }
 0x24a   : > { %3654 = vmatprep.mubr.msk.f32.mxu1 %vm1710_vm3, %v2026_v15 }
 0x24d   : > { %3655 = vmatmul.mubr.msk.f32.vlgmr.msra.gmra.mrb[0].mxu1 %vm1710_vm3, %v4330_v17 }
 0x24e   : > { %3667 = vmatpush3.msra.mxu1 %v1748_v25  ;;  %3657 = vmatprep.mubr.msk.f32.mxu1 %vm1710_vm3, %v4334_v18 }
 0x24f   : > { %3680 = vmatprep.subr.mxu1 %v1749_v27 }
 0x251   : > { %3658 = vmatmul.mubr.msk.f32.gmra.mrb[2].mxu1 %vm1710_vm3, %v4338_v19 }
 0x252   : > { %3660 = vmatprep.mubr.msk.f32.mxu1 %vm1710_vm3, %v4342_v20 }
 0x255   : > { %3661 = vmatmul.mubr.msk.f32.gmra.mrb[4].mxu1 %vm1710_vm3, %v4346_v21 }
 0x256   : > { %3663 = vmatprep.mubr.msk.f32.mxu1 %vm1710_vm3, %v4350_v22 }
 0x259   : > { %3664 = vmatmul.mubr.msk.f32.gmra.mrb[6].mxu1 %vm1710_vm3, %v2467_v28 }
 0x25a   : > { %3668 = vmatprep.mubr.msk.f32.mxu1 %vm1710_vm3, %v4301_v8 }
 0x25d   : > { %3669 = vmatmul.mubr.msk.f32.vlgmr.msra.gmra.mrb[0].mxu1 %vm1710_vm3, %v4305_v9 }
 0x25e   : > { %3681 = vmatpush3.msra.mxu1 %v1749_v27  ;;  %3671 = vmatprep.mubr.msk.f32.mxu1 %vm1710_vm3, %v4309_v10 }
 0x25f   : > { %3694 = vmatprep.subr.mxu1 %v1750_v29 }
 0x261   : > { %3672 = vmatmul.mubr.msk.f32.gmra.mrb[2].mxu1 %vm1710_vm3, %v4313_v11 }
 0x262   : > { %3674 = vmatprep.mubr.msk.f32.mxu1 %vm1710_vm3, %v4317_v12 }
 0x265   : > { %3675 = vmatmul.mubr.msk.f32.gmra.mrb[4].mxu1 %vm1710_vm3, %v4321_v14 }
 0x266   : > { %3677 = vmatprep.mubr.msk.f32.mxu1 %vm1710_vm3, %v2177_v24 }
 0x269   : > { %3678 = vmatmul.mubr.msk.f32.gmra.mrb[6].mxu1 %vm1710_vm3, %v2613_v30 }
 0x26a   : > { %3682 = vmatprep.mubr.msk.f32.mxu1 %vm1710_vm3, %v4270_v60 }
 0x26d   : > { %3683 = vmatmul.mubr.msk.f32.vlgmr.msra.gmra.mrb[0].mxu1 %vm1710_vm3, %v4275_v63 }
 0x26e   : > { %3695 = vmatpush3.msra.mxu1 %v1750_v29  ;;  %3685 = vmatprep.mubr.msk.f32.mxu1 %vm1710_vm3, %v4280_v1 }
 0x271   : > { %3686 = vmatmul.mubr.msk.f32.gmra.mrb[2].mxu1 %vm1710_vm3, %v4284_v2 }
 0x272   : > { %3688 = vmatprep.mubr.msk.f32.mxu1 %vm1710_vm3, %v4288_v3 }
 0x275   : > { %3689 = vmatmul.mubr.msk.f32.gmra.mrb[4].mxu1 %vm1710_vm3, %v4292_v5 }
 0x276   : > { %3691 = vmatprep.mubr.msk.f32.mxu1 %vm1710_vm3, %v2322_v26 }
 0x279   : > { %3692 = vmatmul.mubr.msk.f32.gmra.mrb[6].mxu1 %vm1710_vm3, %v2758_v31 }
 0x27a   : > { %3696 = vmatprep.mubr.msk.f32.mxu1 %vm1710_vm3, %v4330_v17 }
 0x27d   : > { %3697 = vmatmul.mubr.msk.f32.vlgmr.msra.gmra.mrb[0].mxu1 %vm1710_vm3, %v4334_v18 }
 0x27e   : > { %3699 = vmatprep.mubr.msk.f32.mxu1 %vm1710_vm3, %v4338_v19 }
 0x281   : > { %3700 = vmatmul.mubr.msk.f32.gmra.mrb[2].mxu1 %vm1710_vm3, %v4342_v20 }
 0x282   : > { %3702 = vmatprep.mubr.msk.f32.mxu1 %vm1710_vm3, %v4346_v21 }
 0x285   : > { %3703 = vmatmul.mubr.msk.f32.gmra.mrb[4].mxu1 %vm1710_vm3, %v4350_v22 }
 0x286   : > { %3705 = vmatprep.mubr.msk.f32.mxu1 %vm1710_vm3, %v2467_v28 }
 0x289   : > { %3706 = vmatmul.mubr.msk.f32.gmra.mrb[6].mxu1 %vm1710_vm3, %v2903_v32 }
 0x350   : > { %v3698_v34 = vpop.f32.mrb[0].mxu1 }
 0x351   : > { %v3048_v35 = vadd.f32 %v3698_v34, %v3289_v33  ;;  %v2994_v36 = vpop.f32.mrb[1].mxu1 }
 0x352   : > { %v3047_v37 = vadd.f32 %v3289_v33, %v2994_v36 }
 0x353   : > { %v3056_v0 = vmax.f32 %v3048_v35, 0.0 }
 0x354   : > { %v3055_v38 = vmax.f32 %v3047_v37, 0.0  ;;  %v3701_v39 = vpop.f32.mrb[2].mxu1 }
 0x355   : > { %3064 = vst.msk [vmem:[%s224_s23 + $0x8] sm:$0xff] %vm1710_vm3, %v3056_v0  ;;  %v3050_v40 = vadd.f32 %v3701_v39, %v3289_v33  ;;  %v3004_v41 = vpop.f32.mrb[3].mxu1 }
 0x356   : > { %3063 = vst.msk [vmem:[%s224_s23] sm:$0xff] %vm1710_vm3, %v3055_v38  ;;  %v3049_v42 = vadd.f32 %v3289_v33, %v3004_v41 }
 0x357   : > { %v3058_v43 = vmax.f32 %v3050_v40, 0.0 }
 0x358   : > { %v3057_v44 = vmax.f32 %v3049_v42, 0.0  ;;  %v3704_v45 = vpop.f32.mrb[4].mxu1 }
 0x359   : > { %3066 = vst.msk [vmem:[%s224_s23 + $0x18] sm:$0xff] %vm1710_vm3, %v3058_v43  ;;  %v3052_v46 = vadd.f32 %v3704_v45, %v3289_v33  ;;  %v3014_v47 = vpop.f32.mrb[5].mxu1 }
 0x35a   : > { %3065 = vst.msk [vmem:[%s224_s23 + $0x10] sm:$0xff] %vm1710_vm3, %v3057_v44  ;;  %v3051_v48 = vadd.f32 %v3289_v33, %v3014_v47 }
 0x35b   : > { %v3060_v49 = vmax.f32 %v3052_v46, 0.0 }
 0x35c   : > { %v3059_v50 = vmax.f32 %v3051_v48, 0.0  ;;  %v3707_v51 = vpop.f32.mrb[6].mxu1 }
 0x35d   : > { %3068 = vst.msk [vmem:[%s224_s23 + $0x28] sm:$0xff] %vm1710_vm3, %v3060_v49  ;;  %v3054_v52 = vadd.f32 %v3707_v51, %v3289_v33  ;;  %v3024_v53 = vpop.f32.mrb[7].mxu1 }
 0x35e   : > { %3067 = vst.msk [vmem:[%s224_s23 + $0x20] sm:$0xff] %vm1710_vm3, %v3059_v50  ;;  %v3053_v54 = vadd.f32 %v3289_v33, %v3024_v53 }
 0x35f   : > { %v3062_v55 = vmax.f32 %v3054_v52, 0.0 }
 0x360   : > { %v3061_v56 = vmax.f32 %v3053_v54, 0.0 }
 0x361   : > { %3070 = vst.msk [vmem:[%s224_s23 + $0x38] sm:$0xff] %vm1710_vm3, %v3062_v55 }
 0x362   : > { %3069 = vst.msk [vmem:[%s224_s23 + $0x30] sm:$0xff] %vm1710_vm3, %v3061_v56 }
 0x363 PF: > { %s15_s18 = sadd.s32 1, %s3852_s18  }
 0x364   : > { %p12_p4 = scmp.ge.s32.totalorder %s15_s18, 4  }
 0x366   :  { %14 = sbr.rel (!%p12_p4) target bundleno = 1 (0x1), region = 74 }

</bundles_post_ra>
